<compile_context>
chip_gen: v7x
topology: tpu7x:2x2x1
jax: 0.10.0
libtpu: 0.0.40
codegen_flags: <defaults>
</compile_context>

<pallas_src>
import jax
import jax.numpy as jnp
from jax.experimental import pallas as pl
from jax.experimental.pallas import tpu as pltpu

IN_FEATURES = 29
DEFAULT_TILE_B = 8192      # batch tile (sublane axis); multiple of 256
MEGACORE_MIN_B = 512       # above this, force >= 2 grid steps (v7x: 2 TensorCores)


def _round_up(n, m):
    return ((n + m - 1) // m) * m


def mlp_kernel(x_ref, w1_ref, b1_ref, w2_ref, b2_ref, w3_ref, b3_ref, o_ref):
    """One batch tile: sigmoid(relu(relu(x @ W1T + b1) @ W2T + b2) @ W3T + b3)."""
    x = x_ref[...]                                                    # (TILE_B, 29) f32

    # fc1 + ReLU.  Dropout(p=0.2) is identity in eval mode.
    # TODO(synk): training-mode Dropout (PRNG mask + 1/(1-p) scaling) not implemented.
    h1 = jnp.dot(x, w1_ref[...], preferred_element_type=jnp.float32) + b1_ref[...]
    h1 = jnp.maximum(h1, 0.0)                                         # (TILE_B, 16)

    # fc2 + ReLU
    h2 = jnp.dot(h1, w2_ref[...], preferred_element_type=jnp.float32) + b2_ref[...]
    h2 = jnp.maximum(h2, 0.0)                                         # (TILE_B, 8)

    # fc3 + Sigmoid (exp runs on the EUP slot; exact division for stability)
    z = jnp.dot(h2, w3_ref[...], preferred_element_type=jnp.float32) + b3_ref[...]
    o_ref[...] = 1.0 / (1.0 + jnp.exp(-z))                            # (TILE_B, 1)


def net_forward(x, params, *, tile_b=DEFAULT_TILE_B):
    """x: (B, 29) float32 -> (B, 1) float32, matching Net.forward (eval mode)."""
    w1, b1, w2, b2, w3, b3 = params
    B, F = x.shape
    assert F == IN_FEATURES

    # PyTorch layout (out, in) -> kernel layout (in, out); biases as (1, out) rows.
    w1t, w2t, w3t = w1.T, w2.T, w3.T
    b1r, b2r, b3r = b1.reshape(1, -1), b2.reshape(1, -1), b3.reshape(1, -1)

    # --- batch tile selection -------------------------------------------------
    # Sublane axis only needs 8-alignment on the block; no padding of x itself —
    # the (partial) last block's OOB rows are read as garbage and their output
    # rows are masked on writeback.
    tile = min(tile_b, _round_up(B, 8))
    if B >= MEGACORE_MIN_B and pl.cdiv(B, tile) < 2:
        # Keep >= 2 grid steps so both v7x TensorCores get work.
        tile = _round_up(pl.cdiv(B, 2), 256)
    grid = (pl.cdiv(B, tile),)

    # Advisory cost so XLA schedules surrounding ops around the custom call.
    n_params = 29 * 16 + 16 + 16 * 8 + 8 + 8 * 1 + 1
    cost = pl.CostEstimate(
        flops=2 * B * (29 * 16 + 16 * 8 + 8 * 1),
        transcendentals=B,
        bytes_accessed=B * (F * 4 + 4) + n_params * 4,
    )

    const = lambda i: (0, 0)   # params: VMEM-resident across all grid steps

    out = pl.pallas_call(
        mlp_kernel,
        out_shape=jax.ShapeDtypeStruct((B, 1), jnp.float32),
        grid=grid,
        in_specs=[
            pl.BlockSpec((tile, F), lambda i: (i, 0)),   # x tile, double-buffered
            pl.BlockSpec(w1t.shape, const),
            pl.BlockSpec(b1r.shape, const),
            pl.BlockSpec(w2t.shape, const),
            pl.BlockSpec(b2r.shape, const),
            pl.BlockSpec(w3t.shape, const),
            pl.BlockSpec(b3r.shape, const),
        ],
        out_specs=pl.BlockSpec((tile, 1), lambda i: (i, 0)),
        compiler_params=pltpu.CompilerParams(
            dimension_semantics=("parallel",),           # 2-TC sharding on v7x
            vmem_limit_bytes=48 * 1024 * 1024,           # ~32 MiB worst case @ tile=8192
        ),
        cost_estimate=cost,
    )(x, w1t, b1r, w2t, b2r, w3t, b3r)

    return out


def init_params(key):
    """Deterministic init mirroring nn.Linear: 29->16, 16->8, 8->1.
    Weights are (out_features, in_features) (PyTorch layout), biases (out_features,)."""
    ks = jax.random.split(key, 6)

    def linear(kw, kb, fan_in, fan_out):
        bound = 1.0 / jnp.sqrt(fan_in)
        w = jax.random.uniform(kw, (fan_out, fan_in), jnp.float32, -bound, bound)
        b = jax.random.uniform(kb, (fan_out,), jnp.float32, -bound, bound)
        return w, b

    w1, b1 = linear(ks[0], ks[1], 29, 16)
    w2, b2 = linear(ks[2], ks[3], 16, 8)
    w3, b3 = linear(ks[4], ks[5], 8, 1)
    return (w1, b1, w2, b2, w3, b3)


def _reference(x, params):
    w1, b1, w2, b2, w3, b3 = params
    h = jnp.maximum(x @ w1.T + b1, 0.0)
    h = jnp.maximum(h @ w2.T + b2, 0.0)
    return jax.nn.sigmoid(h @ w3.T + b3)


if __name__ == "__main__":
    key = jax.random.PRNGKey(0)
    k_x, k_x2, k_p = jax.random.split(key, 3)
    params = init_params(k_p)

    # Small batch: single exact tile.
    B = 8
    x = jax.random.normal(k_x, (B, 29), dtype=jnp.float32)
    out = jax.block_until_ready(net_forward(x, params))
    ref = _reference(x, params)
    assert out.shape == (B, 1)
    assert jnp.allclose(out, ref, atol=1e-3), "mismatch vs reference (B=8)"

    # Larger batch: exercises multi-step grid (megacore clamp -> tile=512, grid=2)
    # and a partial last block (masked writeback).
    B2 = 1000
    x2 = jax.random.normal(k_x2, (B2, 29), dtype=jnp.float32)
    out2 = jax.block_until_ready(net_forward(x2, params))
    ref2 = _reference(x2, params)
    assert out2.shape == (B2, 1)
    assert jnp.allclose(out2, ref2, atol=1e-3), "mismatch vs reference (B=1000)"

    print("KERNEL_OK")
</pallas_src>

<mosaic_0001>
module attributes {stable_mosaic.version = 11 : i64} {
  func.func @mlp_kernel(%arg0: i32, %arg1: memref<8x29xf32, #tpu.memory_space<vmem>>, %arg2: memref<29x16xf32, #tpu.memory_space<vmem>>, %arg3: memref<1x16xf32, #tpu.memory_space<vmem>>, %arg4: memref<16x8xf32, #tpu.memory_space<vmem>>, %arg5: memref<1x8xf32, #tpu.memory_space<vmem>>, %arg6: memref<8x1xf32, #tpu.memory_space<vmem>>, %arg7: memref<1x1xf32, #tpu.memory_space<vmem>>, %arg8: memref<8x1xf32, #tpu.memory_space<vmem>>) attributes {dimension_semantics = [#tpu.dimension_semantics<parallel>], iteration_bounds = array<i64: 1>, scalar_prefetch = 0 : i64, scratch_operands = 0 : i64, tpu.core_type = #tpu.core_type<tc>, window_params = [{transform_indices = @transform_0, window_bounds = array<i64: 8, 29>}, {pipeline_mode = #tpu.pipeline_mode<synchronous>, transform_indices = @transform_1, window_bounds = array<i64: 29, 16>}, {pipeline_mode = #tpu.pipeline_mode<synchronous>, transform_indices = @transform_2, window_bounds = array<i64: 1, 16>}, {pipeline_mode = #tpu.pipeline_mode<synchronous>, transform_indices = @transform_3, window_bounds = array<i64: 16, 8>}, {pipeline_mode = #tpu.pipeline_mode<synchronous>, transform_indices = @transform_4, window_bounds = array<i64: 1, 8>}, {pipeline_mode = #tpu.pipeline_mode<synchronous>, transform_indices = @transform_5, window_bounds = array<i64: 8, 1>}, {pipeline_mode = #tpu.pipeline_mode<synchronous>, transform_indices = @transform_6, window_bounds = array<i64: 1, 1>}, {transform_indices = @transform_7, window_bounds = array<i64: 8, 1>}]} {
    %c0 = arith.constant 0 : index
    %c0_0 = arith.constant 0 : index
    %0 = vector.load %arg1[%c0, %c0_0] : memref<8x29xf32, #tpu.memory_space<vmem>>, vector<8x29xf32>
    %c0_1 = arith.constant 0 : index
    %c0_2 = arith.constant 0 : index
    %1 = vector.load %arg2[%c0_1, %c0_2] : memref<29x16xf32, #tpu.memory_space<vmem>>, vector<29x16xf32>
    %cst = arith.constant dense<0.000000e+00> : vector<8x16xf32>
    %2 = tpu.matmul %0, %1, %cst {dimension_numbers = #tpu.dot_dimension_numbers<[1], [0], [0], [1], [0, 0, 1, 1], [], []>} : vector<8x29xf32>, vector<29x16xf32>, vector<8x16xf32> -> vector<8x16xf32>
    %c0_3 = arith.constant 0 : index
    %c0_4 = arith.constant 0 : index
    %3 = vector.load %arg3[%c0_3, %c0_4] : memref<1x16xf32, #tpu.memory_space<vmem>>, vector<1x16xf32>
    %4 = vector.broadcast %3 : vector<1x16xf32> to vector<8x16xf32>
    %5 = arith.addf %2, %4 : vector<8x16xf32>
    %cst_5 = arith.constant 0.000000e+00 : f32
    %6 = vector.broadcast %cst_5 : f32 to vector<8x16xf32>
    %7 = arith.maximumf %5, %6 : vector<8x16xf32>
    %c0_6 = arith.constant 0 : index
    %c0_7 = arith.constant 0 : index
    %8 = vector.load %arg4[%c0_6, %c0_7] : memref<16x8xf32, #tpu.memory_space<vmem>>, vector<16x8xf32>
    %cst_8 = arith.constant dense<0.000000e+00> : vector<8x8xf32>
    %9 = tpu.matmul %7, %8, %cst_8 {dimension_numbers = #tpu.dot_dimension_numbers<[1], [0], [0], [1], [0, 0, 1, 1], [], []>} : vector<8x16xf32>, vector<16x8xf32>, vector<8x8xf32> -> vector<8x8xf32>
    %c0_9 = arith.constant 0 : index
    %c0_10 = arith.constant 0 : index
    %10 = vector.load %arg5[%c0_9, %c0_10] : memref<1x8xf32, #tpu.memory_space<vmem>>, vector<1x8xf32>
    %11 = vector.broadcast %10 : vector<1x8xf32> to vector<8x8xf32>
    %12 = arith.addf %9, %11 : vector<8x8xf32>
    %cst_11 = arith.constant 0.000000e+00 : f32
    %13 = vector.broadcast %cst_11 : f32 to vector<8x8xf32>
    %14 = arith.maximumf %12, %13 : vector<8x8xf32>
    %c0_12 = arith.constant 0 : index
    %c0_13 = arith.constant 0 : index
    %15 = vector.load %arg6[%c0_12, %c0_13] : memref<8x1xf32, #tpu.memory_space<vmem>>, vector<8x1xf32>
    %cst_14 = arith.constant dense<0.000000e+00> : vector<8x1xf32>
    %16 = tpu.matmul %14, %15, %cst_14 {dimension_numbers = #tpu.dot_dimension_numbers<[1], [0], [0], [1], [0, 0, 1, 1], [], []>} : vector<8x8xf32>, vector<8x1xf32>, vector<8x1xf32> -> vector<8x1xf32>
    %c0_15 = arith.constant 0 : index
    %c0_16 = arith.constant 0 : index
    %17 = vector.load %arg7[%c0_15, %c0_16] : memref<1x1xf32, #tpu.memory_space<vmem>>, vector<1x1xf32>
    %18 = vector.broadcast %17 : vector<1x1xf32> to vector<8x1xf32>
    %19 = arith.addf %16, %18 : vector<8x1xf32>
    %cst_17 = arith.constant 0.000000e+00 : f32
    %20 = vector.broadcast %cst_17 : f32 to vector<8x1xf32>
    %21 = arith.subf %20, %19 : vector<8x1xf32>
    %22 = math.exp %21 : vector<8x1xf32>
    %cst_18 = arith.constant 1.000000e+00 : f32
    %23 = vector.broadcast %cst_18 : f32 to vector<8x1xf32>
    %24 = arith.addf %23, %22 : vector<8x1xf32>
    %cst_19 = arith.constant 1.000000e+00 : f32
    %25 = vector.broadcast %cst_19 : f32 to vector<8x1xf32>
    %26 = arith.divf %25, %24 : vector<8x1xf32>
    %c0_20 = arith.constant 0 : index
    %c0_21 = arith.constant 0 : index
    %27 = vector.load %arg8[%c0_20, %c0_21] : memref<8x1xf32, #tpu.memory_space<vmem>>, vector<8x1xf32>
    tpu.vector_store %arg8[%c0_20, %c0_21], %26 {strides = array<i32>} : memref<8x1xf32, #tpu.memory_space<vmem>>, vector<8x1xf32>,
    return
  }
  func.func @transform_0(%arg0: i32) -> (i32, i32) {
    %c0_i32 = arith.constant 0 : i32
    %c0_i32_0 = arith.constant 0 : i32
    return %arg0, %c0_i32 : i32, i32
  }
  func.func @transform_1(%arg0: i32) -> (i32, i32) {
    %c0_i32 = arith.constant 0 : i32
    %c0_i32_0 = arith.constant 0 : i32
    %c0_i32_1 = arith.constant 0 : i32
    return %c0_i32, %c0_i32_0 : i32, i32
  }
  func.func @transform_2(%arg0: i32) -> (i32, i32) {
    %c0_i32 = arith.constant 0 : i32
    %c0_i32_0 = arith.constant 0 : i32
    %c0_i32_1 = arith.constant 0 : i32
    return %c0_i32, %c0_i32_0 : i32, i32
  }
  func.func @transform_3(%arg0: i32) -> (i32, i32) {
    %c0_i32 = arith.constant 0 : i32
    %c0_i32_0 = arith.constant 0 : i32
    %c0_i32_1 = arith.constant 0 : i32
    return %c0_i32, %c0_i32_0 : i32, i32
  }
  func.func @transform_4(%arg0: i32) -> (i32, i32) {
    %c0_i32 = arith.constant 0 : i32
    %c0_i32_0 = arith.constant 0 : i32
    %c0_i32_1 = arith.constant 0 : i32
    return %c0_i32, %c0_i32_0 : i32, i32
  }
  func.func @transform_5(%arg0: i32) -> (i32, i32) {
    %c0_i32 = arith.constant 0 : i32
    %c0_i32_0 = arith.constant 0 : i32
    %c0_i32_1 = arith.constant 0 : i32
    return %c0_i32, %c0_i32_0 : i32, i32
  }
  func.func @transform_6(%arg0: i32) -> (i32, i32) {
    %c0_i32 = arith.constant 0 : i32
    %c0_i32_0 = arith.constant 0 : i32
    %c0_i32_1 = arith.constant 0 : i32
    return %c0_i32, %c0_i32_0 : i32, i32
  }
  func.func @transform_7(%arg0: i32) -> (i32, i32) {
    %c0_i32 = arith.constant 0 : i32
    %c0_i32_0 = arith.constant 0 : i32
    return %arg0, %c0_i32 : i32, i32
  }
}

</mosaic_0001>

<bundles_post_ra>
// kernel: tpu_custom_call.1
= control target key start
LH: loop header
LB: loop body
LE: loop exit
PB: predicated region body
PF: predicated region fallthrough
CT: control target
= control target key end

     0   :  { %v355_v0 = vmov 0.0|0.0   ;;  %vm44_vm0 = vcmask 1044480   ;;  %vm356_vm1 = vmmov 0   ;;  %v357_v6 = vmov 0.0   ;;  %s438_s1 = inlined_call_operand.vmem [shape: f32[29,16], index: 1, kind: input, shape index: {}]   ;;  %s439_s0 = inlined_call_operand.vmem [shape: f32[8,29], index: 0, kind: input, shape index: {}]   ;;  %s440_s3 = inlined_call_operand.vmem [shape: f32[16,8], index: 3, kind: input, shape index: {}]   ;;  %s441_s2 = inlined_call_operand.vmem [shape: f32[1,16], index: 2, kind: input, shape index: {}]   ;;  %s442_s5 = inlined_call_operand.vmem [shape: f32[8,1], index: 5, kind: input, shape index: {}]   ;;  %s443_s6 = inlined_call_operand.<no memory space> [shape: f32[1,1], index: 6, kind: input, shape index: {}]   ;;  %s444_s4 = inlined_call_operand.vmem [shape: f32[1,8], index: 4, kind: input, shape index: {}]   ;;  %s445_s7 = inlined_call_operand.vmem [shape: f32[8,1], index: 7, kind: output, shape index: {}]  }
   0x1   :  { %337 = vmatprep.subr.bf16.mxu0 %v355_v0  ;;  %v29_v1 = vld [vmem:[%s438_s1] sm:$0xff]  ;;  %v30_v2 = vld [vmem:[%s438_s1 + $0x8] sm:$0xff]  ;;  %v31_v3 = vld [vmem:[%s438_s1 + $0x10] sm:$0xff]  ;;  %344 = vmatprep.subr.bf16.mxu1 %v355_v0  ;;  %vm358_vm2 = vmmov 1   ;;  %vm40_vm4 = vcmask 236544   ;;  %vm128_vm5 = vcmask 130048   ;;  %v12_v18 = vstv %s443_s6 }
   0x2   :  { %v338_v4 = vpack.c.bf16 %v30_v2, %v29_v1  ;;  %v32_v5 = vld [vmem:[%s438_s1 + $0x18] sm:$0x1f]  ;;  %322 = vmatprep.mubr.msk.f32.mxu0 %vm356_vm1, %v357_v6  ;;  %329 = vmatprep.mubr.msk.f32.mxu1 %vm356_vm1, %v357_v6  ;;  %vm342_vm3 = vmpackc.low %vm44_vm0, %vm358_vm2  ;;  %v28_v8 = vld [vmem:[%s439_s0] sm:$0xff]  ;;  %13 = vst [vmem:[#allocation2] sm:$0x1] %v12_v18  ;;  %vm211_vm6 = vcmask 64512  }
   0x3   :  { %v341_v7 = vpack.c.bf16 %v32_v5, %v31_v3  ;;  %v119_v9 = vld [vmem:[%s440_s3] sm:$0xff]  ;;  %v120_v10 = vld [vmem:[%s440_s3 + $0x8] sm:$0xff]  ;;  %vm291_vm7 = vcmask 7168  }
   0x4   :  { %339 = vmatpush3.bf16.msra.mxu0 %v338_v4  ;;  %v345_v11 = vpack.c.bf16 %v120_v10, %v119_v9  ;;  %v297_v12 = vld [vmem:[%s441_s2] ss:$0 sm:$0xff] }
   0x5   :  { %340 = vmatprep.subr.bf16.mxu0 %v355_v0  ;;  %v203_v17 = vld [vmem:[%s442_s5] sm:$0xff] }
   0x6   :  { %346 = vmatpush3.bf16.msra.mxu1 %v345_v11  ;;  %v300_v19 = vld [vmem:[%s444_s4] ss:$0 sm:$0xff] }
   0x7   :  { %332 = vmatprep.subr.mxu1 %v357_v6 }
   0x8   :  { %343 = vmatpush3.bf16.msk.msra.mxu0 %vm342_vm3, %v341_v7 }
   0x9   :  { %v302_v24 = vld [vmem:[#allocation2] ss:$0 sm:$0xff] }
   0xb   :  { %323 = vmatmul.mubr.msk.f32.vlgmr.msra.gmra.mrb[0].mxu0 %vm40_vm4, %v28_v8 }
  0xde   :  { %v114_v13 = vpop.f32.mrb[0].mxu0 }
  0xdf   :  { %v115_v14 = vadd.f32 %v297_v12, %v114_v13  ;;  %v324_v15 = vpop.f32.mrb[1].mxu0 }
  0xe1   :  { %v118_v16 = vmax.f32 %v115_v14, 0.0 }
  0xe3   :  { %330 = vmatmul.mubr.msk.f32.vlgmr.msra.gmra.mrb[0].mxu1 %vm128_vm5, %v118_v16 }
  0xe4   :  { %334 = vmatprep.mubr.msk.f32.mxu1 %vm356_vm1, %v357_v6  ;;  %333 = vmatpush3.msra.mxu1 %v203_v17 }
 0x1b6   :  { %v198_v20 = vpop.f32.mrb[0].mxu1 }
 0x1b7   :  { %v199_v21 = vadd.f32 %v300_v19, %v198_v20  ;;  %v331_v22 = vpop.f32.mrb[1].mxu1 }
 0x1b9   :  { %v202_v23 = vmax.f32 %v199_v21, 0.0 }
 0x1bb   :  { %335 = vmatmul.mubr.msk.f32.vlgmr.msra.gmra.mrb[2].mxu1 %vm211_vm6, %v202_v23 }
 0x28e   :  { %v281_v25 = vpop.f32.mrb[2].mxu1 }
 0x28f   :  { %v282_v26 = vadd.f32 %v302_v24, %v281_v25  ;;  %v336_v27 = vpop.f32.mrb[3].mxu1 }
 0x291   :  { %v285_v28 = vsub.f32 0.0, %v282_v26 }
 0x293   :  { %v286_v29 = vmul.f32 1.442695, %v285_v28 }
 0x295   :  { %351 = vpow2.f32 %v286_v29 }
 0x29f   :  { %v352_v30 = vpop.eup %351 }
 0x2a0   :  { %v288_v31 = vadd.f32 1.0, %v352_v30 }
 0x2a2   :  { %353 = vrcp.f32 %v288_v31 }
 0x2ac   :  { %v354_v32 = vpop.eup %353 }
 0x2ad   :  { %292 = vst.msk [vmem:[%s445_s7] sm:$0xff] %vm291_vm7, %v354_v32 }

</bundles_post_ra>
